<compile_context>
chip_gen: v7x
topology: tpu7x:2x2x1
jax: 0.10.0
libtpu: 0.0.40
codegen_flags: <defaults>
</compile_context>

<pallas_src>
import functools

import jax
import jax.numpy as jnp
from jax.experimental import pallas as pl
from jax.experimental.pallas import tpu as pltpu


def _round_up(v, m):
    return ((v + m - 1) // m) * m


def _cdiv(a, b):
    return (a + b - 1) // b


def _vmem_capacity_bytes():
    """Physical VMEM of the current chip; conservative (v7x) fallback."""
    try:
        cap = getattr(pltpu.get_tpu_info(), "vmem_capacity_bytes", None)
        if cap:
            return int(cap)
    except Exception:
        pass
    return 64 << 20


def _num_tensorcores():
    """Best-effort TensorCore count (v7x has 2); fall back to 1."""
    try:
        info = pltpu.get_tpu_info()
        for attr in ("num_cores", "cores_per_chip", "core_count"):
            v = getattr(info, attr, None)
            if v:
                return max(1, int(v))
    except Exception:
        pass
    return 1


# ----------------------------------------------------------------------------
# Kernel bodies
# ----------------------------------------------------------------------------
def _masked_adj(adj_ref, k, nk, k_rem):
    """A_hat tile with the ragged reduction remainder (undefined partial-block
    DMA padding) zeroed out.  k_rem is static; 0 emits no masking code."""
    adj = adj_ref[...]
    if k_rem:
        col = jax.lax.broadcasted_iota(jnp.int32, adj.shape, 1)
        bad = jnp.logical_and(k == nk - 1, col >= k_rem)
        adj = jnp.where(bad, jnp.zeros_like(adj), adj)
    return adj


def _feat_tile(feat_ref, k, tk, feat_resident):
    """Current reduction slice of the (resident or streamed) feature operand."""
    if not feat_resident:
        return feat_ref[...]
    start = k * tk
    if tk % 128 == 0:
        start = pl.multiple_of(start, tk)
    return feat_ref[pl.ds(start, tk), :]


def gcn_agg_kernel(adj_ref, xw_ref, b_ref, out_ref, *,
                   apply_relu, k_rem, tk, feat_resident):
    """Hoisted-linear path: out = A_hat @ XW + b  (XW = X @ W^T precomputed).

    adj_ref : [TM, TK]            bf16  A_hat tile (dst rows i, src cols k)
    xw_ref  : [TK, Fo] or [Nk*TK, Fo]  bf16  XW slice (streamed) or resident
    b_ref   : [1, Fo]             f32   bias row (resident)
    out_ref : [TM, Fo]            f32   output tile == f32 accumulator
                                        (resident across the reduction axis)
    """
    k = pl.program_id(1)
    nk = pl.num_programs(1)

    @pl.when(k == 0)
    def _init():
        out_ref[...] = jnp.zeros_like(out_ref)

    adj = _masked_adj(adj_ref, k, nk, k_rem)
    xw = _feat_tile(xw_ref, k, tk, feat_resident)
    out_ref[...] += jnp.dot(adj, xw, preferred_element_type=jnp.float32)

    @pl.when(k == nk - 1)
    def _finalize():
        h = out_ref[...] + b_ref[...]          # bias added exactly once
        if apply_relu:
            h = jnp.maximum(h, 0.0)
        out_ref[...] = h


def gcn_agg_linear_kernel(adj_ref, x_ref, wt_ref, b_ref, out_ref, acc_ref, *,
                          apply_relu, k_rem, tk, feat_resident):
    """Module-literal order (used when F_out_pad > F_in_pad):
    acc = A_hat @ X accumulated in f32; at the last reduction step
    out = acc @ W^T + b, with the final matmul kept in f32 so large aggregated
    sums are never squeezed through bf16."""
    k = pl.program_id(1)
    nk = pl.num_programs(1)

    @pl.when(k == 0)
    def _init():
        acc_ref[...] = jnp.zeros_like(acc_ref)

    adj = _masked_adj(adj_ref, k, nk, k_rem)
    x = _feat_tile(x_ref, k, tk, feat_resident)
    acc_ref[...] += jnp.dot(adj, x, preferred_element_type=jnp.float32)

    @pl.when(k == nk - 1)
    def _finalize():
        h = jnp.dot(acc_ref[...], wt_ref[...],
                    preferred_element_type=jnp.float32)
        h = h + b_ref[...]
        if apply_relu:
            h = jnp.maximum(h, 0.0)
        out_ref[...] = h


# ----------------------------------------------------------------------------
# Wrapper
# ----------------------------------------------------------------------------
def gcn_layer_forward(adj_hat, x, w, b, *, apply_relu=False,
                      tm=512, tk=1024, feat_resident=None,
                      vmem_limit_bytes=None):
    """GCNLayer forward:  out = (A_hat @ x) @ w.T + b   (optionally fused relu).

    adj_hat: [N, N] (ideally pre-stored as bf16 -- values are {0,1} so bf16 is
             exact; an f32 input is cast here at the cost of one extra HBM
             round trip of the N^2 array), x: [N, F_in],
    w: [F_out, F_in] (PyTorch nn.Linear layout), b: [F_out].
    Returns [N, F_out] f32.
    """
    n, f_in = x.shape
    f_out, f_in_w = w.shape
    assert f_in_w == f_in, "weight / feature shape mismatch"
    assert adj_hat.shape == (n, n), "adjacency / feature shape mismatch"

    f_in_p = _round_up(f_in, 128)
    f_out_p = _round_up(f_out, 128)

    # ---- per-generation VMEM budget ----------------------------------------
    if vmem_limit_bytes is None:
        phys = _vmem_capacity_bytes()
        # ~48 MiB on v7x (64 MiB physical), ~100 MiB on v5e/v6e (128 MiB).
        vmem_limit_bytes = max(32 << 20, min(phys - (16 << 20), 100 << 20))

    # ---- tile sizing --------------------------------------------------------
    # tm: destination-row tile -- multiple of 256 when possible (MXU-native on
    # v6e/v7x), at minimum a multiple of 8, never larger than N.
    tm = max(8, (tm // 8) * 8)
    if tm >= 256:
        tm = (tm // 256) * 256
    if tm >= n:
        tm = n
    # tk: source-node (reduction) tile -- multiple of 128 lanes, never > N.
    tk = max(128, (tk // 128) * 128)
    if tk >= n:
        tk = n

    # v7x has 2 TensorCores: make sure the "parallel" row axis has a tile for
    # each core when the graph is big enough (no-op on single-core chips).
    cores = min(2, _num_tensorcores())
    if cores > 1 and _cdiv(n, tm) < cores and n >= cores * 8:
        tm = max(8, _round_up(_cdiv(n, cores), 8))
        if tm >= n:
            tm = n

    n_row_tiles = _cdiv(n, tm)
    n_k = _cdiv(n, tk)
    n_feat_rows = n_k * tk        # feature operand padded to cover all k slices
    k_rem = n % tk                # ragged A_hat columns in the last k tile

    # ---- operand prep (only the small N x F arrays are padded/copied) -------
    adj_bf16 = adj_hat if adj_hat.dtype == jnp.bfloat16 else adj_hat.astype(jnp.bfloat16)
    b_p = jnp.zeros((1, f_out_p), jnp.float32).at[0, :f_out].set(
        b.astype(jnp.float32))

    reassociate = f_out_p <= f_in_p
    if reassociate:
        # Hoist the linear out of the kernel: XW = X @ W^T once (plain XLA
        # GEMM, f32) -> the kernel only runs the N^2 aggregation at the
        # narrower width F_out_pad.
        xw = jnp.dot(x.astype(jnp.float32), w.astype(jnp.float32).T)
        feat = jnp.zeros((n_feat_rows, f_out_p), jnp.bfloat16)
        feat = feat.at[:n, :f_out].set(xw.astype(jnp.bfloat16))
        feat_width = f_out_p
        wt_p = None
    else:
        feat = jnp.zeros((n_feat_rows, f_in_p), jnp.bfloat16)
        feat = feat.at[:n, :f_in].set(x.astype(jnp.bfloat16))
        feat_width = f_in_p
        # W^T resident in f32 so the finalize matmul keeps full precision.
        wt_p = jnp.zeros((f_in_p, f_out_p), jnp.float32).at[:f_in, :f_out].set(
            w.T.astype(jnp.float32))

    # ---- VMEM-residency decision for the feature operand --------------------
    feat_bytes = int(feat.size) * 2                       # bf16

    def _vmem_estimate(resident):
        e = 2 * tm * tk * 2                               # A_hat tiles, dbl-buffered
        e += 2 * tm * f_out_p * 4                         # output tile, f32
        e += 2 * (feat_bytes if resident else tk * feat_width * 2)
        e += 2 * f_out_p * 4                              # bias row
        if not reassociate:
            e += 2 * f_in_p * f_out_p * 4                 # resident W^T (f32)
            e += tm * f_in_p * 4                          # f32 accumulator scratch
        return e

    if feat_resident is None:
        feat_resident = _vmem_estimate(True) <= int(0.8 * vmem_limit_bytes)

    # ---- specs / kernel ------------------------------------------------------
    adj_spec = pl.BlockSpec((tm, tk), lambda i, k: (i, k))
    if feat_resident:
        # DMA'd once, stays in VMEM for the whole grid; kernel slices rows.
        feat_spec = pl.BlockSpec((n_feat_rows, feat_width), lambda i, k: (0, 0))
    else:
        feat_spec = pl.BlockSpec((tk, feat_width), lambda i, k: (k, 0))
    b_spec = pl.BlockSpec((1, f_out_p), lambda i, k: (0, 0))
    out_spec = pl.BlockSpec((tm, f_out_p), lambda i, k: (i, 0))

    common = dict(apply_relu=apply_relu, k_rem=k_rem, tk=tk,
                  feat_resident=feat_resident)
    if reassociate:
        kernel = functools.partial(gcn_agg_kernel, **common)
        in_specs = [adj_spec, feat_spec, b_spec]
        operands = (adj_bf16, feat, b_p)
        scratch_shapes = []
    else:
        kernel = functools.partial(gcn_agg_linear_kernel, **common)
        wt_spec = pl.BlockSpec((f_in_p, f_out_p), lambda i, k: (0, 0))
        in_specs = [adj_spec, feat_spec, wt_spec, b_spec]
        operands = (adj_bf16, feat, wt_p, b_p)
        scratch_shapes = [pltpu.VMEM((tm, f_in_p), jnp.float32)]

    out_p = pl.pallas_call(
        kernel,
        out_shape=jax.ShapeDtypeStruct((n, f_out_p), jnp.float32),
        grid_spec=pltpu.PrefetchScalarGridSpec(
            num_scalar_prefetch=0,
            grid=(n_row_tiles, n_k),
            in_specs=in_specs,
            out_specs=out_spec,
            scratch_shapes=scratch_shapes,
        ),
        compiler_params=pltpu.CompilerParams(
            dimension_semantics=("parallel", "arbitrary"),
            vmem_limit_bytes=vmem_limit_bytes,
        ),
    )(*operands)

    return out_p[:, :f_out]


# ----------------------------------------------------------------------------
# Test harness
# ----------------------------------------------------------------------------
def build_adj_hat(key, n, p=0.05):
    """Random directed graph; A_hat[dst, src] = 1 per edge, plus a self-loop
    for nodes with zero in-degree (DGL send_and_recv keeps their own feature).
    Values are {0, 1}, so bf16 storage is lossless."""
    a = jax.random.bernoulli(key, p=p, shape=(n, n)).astype(jnp.float32)
    a = a * (1.0 - jnp.eye(n, dtype=jnp.float32))        # no self-edges
    keep_self = (a.sum(axis=1) == 0).astype(jnp.float32)
    return a + jnp.diag(keep_self)


def _run_case(key, *, n, f_in, f_out, apply_relu, **kw):
    k_adj, k_x, k_w, k_b = jax.random.split(key, 4)
    adj_hat = build_adj_hat(k_adj, n, p=0.05)
    x = jax.random.normal(k_x, (n, f_in), dtype=jnp.float32)
    # PyTorch nn.Linear layout: W [out, in], b [out].
    w = jax.random.normal(k_w, (f_out, f_in), dtype=jnp.float32) * 0.1
    b = jax.random.normal(k_b, (f_out,), dtype=jnp.float32)

    # Pre-store the adjacency in bf16 (lossless for {0,1}) so the wrapper does
    # not need an extra HBM round trip on the dominant N^2 array.
    out = gcn_layer_forward(adj_hat.astype(jnp.bfloat16), x, w, b,
                            apply_relu=apply_relu, **kw)
    out = jax.block_until_ready(out)

    # Pure-f32 reference for the module semantics.
    ref = (adj_hat @ x) @ w.T + b
    if apply_relu:
        ref = jnp.maximum(ref, 0.0)

    assert out.shape == (n, f_out), out.shape
    # bf16 MXU operands -> compare with a scale-normalized max error.
    err = jnp.max(jnp.abs(out - ref)) / (jnp.max(jnp.abs(ref)) + 1e-6)
    assert err < 3e-2, f"relative error too large: {err}"


if __name__ == "__main__":
    key = jax.random.PRNGKey(0)
    k1, k2, k3 = jax.random.split(key, 3)

    # Case A: hoisted-linear path (F_out_pad <= F_in_pad), default big tiles
    # auto-clamped to the problem, feature operand auto-resident in VMEM.
    _run_case(k1, n=160, f_in=48, f_out=96, apply_relu=False)

    # Case B: module-literal path (F_out_pad > F_in_pad): in-kernel f32
    # accumulation + final @ W^T, multi-tile grid with ragged last tiles
    # (200 % 128 != 0) exercising the in-kernel remainder mask, fused relu.
    _run_case(k2, n=200, f_in=48, f_out=200, apply_relu=True, tm=128, tk=128)

    # Case C: hoisted path with the *streamed* (non-resident) feature operand
    # forced, ragged reduction remainder and a 3x2 grid, fused relu.
    _run_case(k3, n=160, f_in=192, f_out=8, apply_relu=True,
              tm=64, tk=128, feat_resident=False)

    print("KERNEL_OK")
</pallas_src>

<mosaic_0001>
module attributes {stable_mosaic.version = 11 : i64} {
  func.func @gcn_agg_kernel(%arg0: i32, %arg1: i32, %arg2: memref<160x160xbf16, #tpu.memory_space<vmem>>, %arg3: memref<160x128xbf16, #tpu.memory_space<vmem>>, %arg4: memref<1x128xf32, #tpu.memory_space<vmem>>, %arg5: memref<160x128xf32, #tpu.memory_space<vmem>>) attributes {dimension_semantics = [#tpu.dimension_semantics<parallel>, #tpu.dimension_semantics<arbitrary>], iteration_bounds = array<i64: 1, 1>, scalar_prefetch = 0 : i64, scratch_operands = 0 : i64, tpu.core_type = #tpu.core_type<tc>, window_params = [{transform_indices = @transform_0, window_bounds = array<i64: 160, 160>}, {pipeline_mode = #tpu.pipeline_mode<synchronous>, transform_indices = @transform_1, window_bounds = array<i64: 160, 128>}, {pipeline_mode = #tpu.pipeline_mode<synchronous>, transform_indices = @transform_2, window_bounds = array<i64: 1, 128>}, {transform_indices = @transform_3, window_bounds = array<i64: 160, 128>}]} {
    %c0_i32 = arith.constant 0 : i32
    %0 = arith.cmpi eq, %arg1, %c0_i32 : i32
    %1 = arith.extui %0 : i1 to i32
    %c0_i32_0 = arith.constant 0 : i32
    %2 = arith.cmpi ne, %1, %c0_i32_0 : i32
    scf.if %2 {
      %cst_9 = arith.constant 0.000000e+00 : f32
      %14 = vector.broadcast %cst_9 : f32 to vector<160x128xf32>
      %c0_10 = arith.constant 0 : index
      %c0_11 = arith.constant 0 : index
      %15 = vector.load %arg5[%c0_10, %c0_11] : memref<160x128xf32, #tpu.memory_space<vmem>>, vector<160x128xf32>
      tpu.vector_store %arg5[%c0_10, %c0_11], %14 {strides = array<i32>} : memref<160x128xf32, #tpu.memory_space<vmem>>, vector<160x128xf32>,
    } else {
    }
    %c0 = arith.constant 0 : index
    %c0_1 = arith.constant 0 : index
    %3 = vector.load %arg2[%c0, %c0_1] : memref<160x160xbf16, #tpu.memory_space<vmem>>, vector<160x160xbf16>
    %c160_i32 = arith.constant 160 : i32
    %4 = arith.muli %arg1, %c160_i32 : i32
    %5 = arith.index_cast %4 : i32 to index
    %c0_2 = arith.constant 0 : index
    %6 = vector.load %arg3[%5, %c0_2] : memref<160x128xbf16, #tpu.memory_space<vmem>>, vector<160x128xbf16>
    %c0_3 = arith.constant 0 : index
    %c0_4 = arith.constant 0 : index
    %7 = vector.load %arg5[%c0_3, %c0_4] : memref<160x128xf32, #tpu.memory_space<vmem>>, vector<160x128xf32>
    %cst = arith.constant dense<0.000000e+00> : vector<160x128xf32>
    %8 = tpu.matmul %3, %6, %cst {dimension_numbers = #tpu.dot_dimension_numbers<[1], [0], [0], [1], [0, 0, 1, 1], [], []>} : vector<160x160xbf16>, vector<160x128xbf16>, vector<160x128xf32> -> vector<160x128xf32>
    %9 = arith.addf %7, %8 : vector<160x128xf32>
    %c0_5 = arith.constant 0 : index
    %c0_6 = arith.constant 0 : index
    %10 = vector.load %arg5[%c0_5, %c0_6] : memref<160x128xf32, #tpu.memory_space<vmem>>, vector<160x128xf32>
    tpu.vector_store %arg5[%c0_5, %c0_6], %9 {strides = array<i32>} : memref<160x128xf32, #tpu.memory_space<vmem>>, vector<160x128xf32>,
    %c0_i32_7 = arith.constant 0 : i32
    %11 = arith.cmpi eq, %arg1, %c0_i32_7 : i32
    %12 = arith.extui %11 : i1 to i32
    %c0_i32_8 = arith.constant 0 : i32
    %13 = arith.cmpi ne, %12, %c0_i32_8 : i32
    scf.if %13 {
      %c0_9 = arith.constant 0 : index
      %c0_10 = arith.constant 0 : index
      %14 = vector.load %arg5[%c0_9, %c0_10] : memref<160x128xf32, #tpu.memory_space<vmem>>, vector<160x128xf32>
      %c0_11 = arith.constant 0 : index
      %c0_12 = arith.constant 0 : index
      %15 = vector.load %arg4[%c0_11, %c0_12] : memref<1x128xf32, #tpu.memory_space<vmem>>, vector<1x128xf32>
      %16 = vector.broadcast %15 : vector<1x128xf32> to vector<160x128xf32>
      %17 = arith.addf %14, %16 : vector<160x128xf32>
      %c0_13 = arith.constant 0 : index
      %c0_14 = arith.constant 0 : index
      %18 = vector.load %arg5[%c0_13, %c0_14] : memref<160x128xf32, #tpu.memory_space<vmem>>, vector<160x128xf32>
      tpu.vector_store %arg5[%c0_13, %c0_14], %17 {strides = array<i32>} : memref<160x128xf32, #tpu.memory_space<vmem>>, vector<160x128xf32>,
    } else {
    }
    return
  }
  func.func @transform_0(%arg0: i32, %arg1: i32) -> (i32, i32) {
    %c0_i32 = arith.constant 0 : i32
    return %arg0, %arg1 : i32, i32
  }
  func.func @transform_1(%arg0: i32, %arg1: i32) -> (i32, i32) {
    %c0_i32 = arith.constant 0 : i32
    %c0_i32_0 = arith.constant 0 : i32
    %c0_i32_1 = arith.constant 0 : i32
    return %c0_i32, %c0_i32_0 : i32, i32
  }
  func.func @transform_2(%arg0: i32, %arg1: i32) -> (i32, i32) {
    %c0_i32 = arith.constant 0 : i32
    %c0_i32_0 = arith.constant 0 : i32
    %c0_i32_1 = arith.constant 0 : i32
    return %c0_i32, %c0_i32_0 : i32, i32
  }
  func.func @transform_3(%arg0: i32, %arg1: i32) -> (i32, i32) {
    %c0_i32 = arith.constant 0 : i32
    %c0_i32_0 = arith.constant 0 : i32
    return %arg0, %c0_i32 : i32, i32
  }
}

</mosaic_0001>

<bundles_post_ra>
// kernel: tpu_custom_call.1
= control target key start
LH: loop header
LB: loop body
LE: loop exit
PB: predicated region body
PF: predicated region fallthrough
CT: control target
= control target key end

     0   :  { %8 = vsyncpa [#allocation3], 0  ;;  %s844_s0 = inlined_call_operand.hbm [shape: bf16[160,160], index: 0, kind: input, shape index: {}]   ;;  %s845_s1 = inlined_call_operand.hbm [shape: bf16[160,128], index: 1, kind: input, shape index: {}]   ;;  %s846_s2 = inlined_call_operand.vmem [shape: f32[1,128], index: 2, kind: input, shape index: {}]   ;;  %s847_s3 = inlined_call_operand.hbm [shape: f32[160,128], index: 3, kind: output, shape index: {}]  }
   0x1   :  { %9 = vsyncpa [#allocation6], 0 }
   0x2   :  { %10 = vsyncpa [#allocation4], 0  ;;  %s739_s12 = smov [#allocation2]   ;;  %s667_s16 = scalar_lea.hbm %s844_s0, 2560 }
   0x3   :  { %s16_s13 = sshll.u32 %s739_s12, 4  ;;  %p668_p0 = scmp.ne.s32.totalorder %s844_s0, %s667_s16  ;;  %s17_s13 = int_to_ptr.vmem [resolvable:$true] %s16_s13 }
   0x4   :  { %p671_p1 = scmp.lt.u32.totalorder %s667_s16, %s844_s0 }
   0x6   :  { %p673_p2 = pnand %p671_p1, %p668_p0 }
   0x8   :  { %676 = shalt.err (!%p673_p2)
}
   0x9   :  { %s677_s21 = scalar_lea.vmem %s17_s13, 2560  ;;  %p682_p4 = scmp.lt.s32.totalorder %s17_s13, %s17_s13 }
   0xa   :  { %p678_p3 = scmp.ne.s32.totalorder %s17_s13, %s677_s21  ;;  %p683_p5 = scmp.lt.s32.totalorder %s677_s21, %s677_s21 }
   0xc   :  { %p684_p6 = por %p683_p5, %p682_p4 }
   0xe   :  { %p685_p7 = pnand %p684_p6, %p678_p3 }
  0x10   :  { %688 = shalt.err (!%p685_p7)
}
  0x11   :  { %s740_s22 = smov 128   ;;  %s741_s23 = smov 8  }
  0x12   :  { %22 = dma.hbm_to_vmem [thread:$0]  %s844_s0, 2560, %s17_s13, [#allocation3], %s740_s22, %s740_s22, %s741_s23  }
  0x13   :  { %s742_s26 = smov [#allocation5]   ;;  %s689_s30 = scalar_lea.hbm %s845_s1, 1280 }
  0x14   :  { %s28_s27 = sshll.u32 %s742_s26, 4  ;;  %p690_p8 = scmp.ne.s32.totalorder %s845_s1, %s689_s30  ;;  %s29_s27 = int_to_ptr.vmem [resolvable:$true] %s28_s27 }
  0x15   :  { %p693_p9 = scmp.lt.u32.totalorder %s689_s30, %s845_s1 }
  0x17   :  { %p695_p10 = pnand %p693_p9, %p690_p8 }
  0x19   :  { %698 = shalt.err (!%p695_p10)
}
  0x1a   :  { %s699_s8 = scalar_lea.vmem %s29_s27, 1280  ;;  %p704_p12 = scmp.lt.s32.totalorder %s29_s27, %s29_s27 }
  0x1b   :  { %p700_p11 = scmp.ne.s32.totalorder %s29_s27, %s699_s8  ;;  %p705_p13 = scmp.lt.s32.totalorder %s699_s8, %s699_s8 }
  0x1d   :  { %p706_p0 = por %p705_p13, %p704_p12 }
  0x1f   :  { %p707_p1 = pnand %p706_p0, %p700_p11 }
  0x21   :  { %710 = shalt.err (!%p707_p1)
}
  0x22   :  { %s743_s0 = smov 64   ;;  %s744_s9 = smov 4  }
  0x23   :  { %34 = dma.hbm_to_vmem [thread:$0]  %s845_s1, 1280, %s29_s27, [#allocation6], %s743_s0, %s743_s0, %s744_s9  }
  0x24   :  { %733 = dma.done.wait [#allocation3], 2560  }
  0x25   :  { %734 = vsyncadd [#allocation3], 4294964736 }
  0x26   :  { %735 = dma.done.wait [#allocation6], 1280  }
  0x27   :  { %736 = vsyncadd [#allocation6], 4294966016  ;;  %v745_v0 = vmov 0   ;;  %v627_v1 = vld [vmem:[#allocation5] sm:$0xff]   ;;  %v628_v2 = vld [vmem:[#allocation5 + $0x8] sm:$0xff]   ;;  %vm283_vm0 = vcmask 261120  }
  0x28   :  { %314 = vmatprep.subr.bf16.mxu0 %v745_v0  ;;  %598 = vmatprep.subr.bf16.mxu1 %v745_v0  ;;  %v629_v3 = vld [vmem:[#allocation5 + $0x10] sm:$0xff]   ;;  %v630_v4 = vld [vmem:[#allocation5 + $0x18] sm:$0xff]   ;;  %v639_v5 = vld [vmem:[#allocation2 + $0x4] ss:$8 sps:$4 sm:$0xff]  }
  0x29   :  { %315 = vmatpush1.bf16.msra.mxu0 %v627_v1  ;;  %608 = vmatpush1.bf16.msra.mxu1 %v627_v1  ;;  %v642_v6 = vld [vmem:[#allocation2 + $0x54] ss:$8 sps:$4 sm:$0xff]   ;;  %v631_v7 = vld [vmem:[#allocation5 + $0x20] sm:$0xff]   ;;  %v632_v8 = vld [vmem:[#allocation5 + $0x28] sm:$0xff]  }
  0x2a   :  { %316 = vmatprep.subr.bf16.mxu0 %v745_v0  ;;  %599 = vmatprep.subr.bf16.mxu1 %v745_v0  ;;  %v633_v9 = vld [vmem:[#allocation5 + $0x30] sm:$0xff]   ;;  %v634_v10 = vld [vmem:[#allocation5 + $0x38] sm:$0xff]   ;;  %v635_v11 = vld [vmem:[#allocation5 + $0x40] sm:$0xff]  }
  0x2b   :  { %587 = vmatprep.mubr.msk.bf16.mxu0 %vm283_vm0, %v639_v5  ;;  %592 = vmatprep.mubr.msk.bf16.mxu1 %vm283_vm0, %v642_v6  ;;  %v636_v12 = vld [vmem:[#allocation5 + $0x48] sm:$0xff]   ;;  %v640_v14 = vld [vmem:[#allocation2 + $0x50] ss:$8 sps:$4 sm:$0xff]   ;;  %v643_v15 = vld [vmem:[#allocation2 + $0x14] ss:$8 sps:$4 sm:$0xff]  }
  0x2c   :  { %v637_v13 = vld [vmem:[#allocation2] ss:$8 sps:$4 sm:$0xff]   ;;  %v645_v16 = vld [vmem:[#allocation2 + $0x64] ss:$8 sps:$4 sm:$0xff]   ;;  %v647_v17 = vld [vmem:[#allocation2 + $0x10] ss:$8 sps:$4 sm:$0xff]  }
  0x2d   :  { %317 = vmatpush1.bf16.msra.mxu0 %v628_v2  ;;  %609 = vmatpush1.bf16.msra.mxu1 %v628_v2  ;;  %v648_v18 = vld [vmem:[#allocation2 + $0x60] ss:$8 sps:$4 sm:$0xff]   ;;  %v649_v19 = vld [vmem:[#allocation2 + $0x24] ss:$8 sps:$4 sm:$0xff]   ;;  %v651_v20 = vld [vmem:[#allocation2 + $0x74] ss:$8 sps:$4 sm:$0xff]  }
  0x2e   :  { %318 = vmatprep.subr.bf16.mxu0 %v745_v0  ;;  %600 = vmatprep.subr.bf16.mxu1 %v745_v0  ;;  %v653_v21 = vld [vmem:[#allocation2 + $0x20] ss:$8 sps:$4 sm:$0xff]   ;;  %v654_v22 = vld [vmem:[#allocation2 + $0x70] ss:$8 sps:$4 sm:$0xff]   ;;  %v655_v23 = vld [vmem:[#allocation2 + $0x34] ss:$8 sps:$4 sm:$0xff]  }
  0x2f   :  { %v657_v24 = vld [vmem:[#allocation2 + $0x84] ss:$8 sps:$4 sm:$0xff]   ;;  %v659_v25 = vld [vmem:[#allocation2 + $0x30] ss:$8 sps:$4 sm:$0xff]   ;;  %v660_v26 = vld [vmem:[#allocation2 + $0x80] ss:$8 sps:$4 sm:$0xff]  }
  0x30   :  { %v661_v27 = vld [vmem:[#allocation2 + $0x44] ss:$8 sps:$4 sm:$0xff]   ;;  %v663_v28 = vld [vmem:[#allocation2 + $0x94] ss:$8 sps:$4 sm:$0xff]   ;;  %v665_v29 = vld [vmem:[#allocation2 + $0x40] ss:$8 sps:$4 sm:$0xff]  }
  0x31   :  { %319 = vmatpush1.bf16.msra.mxu0 %v629_v3  ;;  %610 = vmatpush1.bf16.msra.mxu1 %v629_v3  ;;  %v666_v30 = vld [vmem:[#allocation2 + $0x90] ss:$8 sps:$4 sm:$0xff]   ;;  %v807_v32 = vld [vmem:[%s846_s2] ss:$0 sm:$0xff]  ;;  %s746_s2 = smov [#allocation7]  }
  0x32   :  { %320 = vmatprep.subr.bf16.mxu0 %v745_v0  ;;  %601 = vmatprep.subr.bf16.mxu1 %v745_v0  ;;  %s542_s13 = sshll.u32 %s746_s2, 4  ;;  %s543_s13 = int_to_ptr.vmem [resolvable:$true] %s542_s13 }
  0x33   :  { %s711_s14 = scalar_lea.vmem %s543_s13, 2560  ;;  %p716_p3 = scmp.lt.s32.totalorder %s543_s13, %s543_s13 }
  0x34   :  { %p712_p2 = scmp.ne.s32.totalorder %s543_s13, %s711_s14  ;;  %p717_p4 = scmp.lt.s32.totalorder %s711_s14, %s711_s14 }
  0x35   :  { %321 = vmatpush1.bf16.msra.mxu0 %v630_v4  ;;  %611 = vmatpush1.bf16.msra.mxu1 %v630_v4 }
  0x36   :  { %322 = vmatprep.subr.bf16.mxu0 %v745_v0  ;;  %602 = vmatprep.subr.bf16.mxu1 %v745_v0  ;;  %p718_p5 = por %p717_p4, %p716_p3 }
  0x38   :  { %p719_p6 = pnand %p718_p5, %p712_p2 }
  0x39   :  { %323 = vmatpush1.bf16.msra.mxu0 %v631_v7  ;;  %612 = vmatpush1.bf16.msra.mxu1 %v631_v7 }
  0x3a   :  { %324 = vmatprep.subr.bf16.mxu0 %v745_v0  ;;  %603 = vmatprep.subr.bf16.mxu1 %v745_v0 }
  0x3d   :  { %325 = vmatpush1.bf16.msra.mxu0 %v632_v8  ;;  %613 = vmatpush1.bf16.msra.mxu1 %v632_v8 }
  0x3e   :  { %326 = vmatprep.subr.bf16.mxu0 %v745_v0  ;;  %604 = vmatprep.subr.bf16.mxu1 %v745_v0 }
  0x41   :  { %327 = vmatpush1.bf16.msra.mxu0 %v633_v9  ;;  %614 = vmatpush1.bf16.msra.mxu1 %v633_v9 }
  0x42   :  { %328 = vmatprep.subr.bf16.mxu0 %v745_v0  ;;  %605 = vmatprep.subr.bf16.mxu1 %v745_v0 }
  0x45   :  { %329 = vmatpush1.bf16.msra.mxu0 %v634_v10  ;;  %615 = vmatpush1.bf16.msra.mxu1 %v634_v10 }
  0x46   :  { %330 = vmatprep.subr.bf16.mxu0 %v745_v0  ;;  %606 = vmatprep.subr.bf16.mxu1 %v745_v0 }
  0x49   :  { %331 = vmatpush1.bf16.msra.mxu0 %v635_v11  ;;  %616 = vmatpush1.bf16.msra.mxu1 %v635_v11 }
  0x4a   :  { %332 = vmatprep.subr.bf16.mxu0 %v745_v0  ;;  %607 = vmatprep.subr.bf16.mxu1 %v745_v0 }
  0x4d   :  { %333 = vmatpush1.bf16.msra.mxu0 %v636_v12  ;;  %617 = vmatpush1.bf16.msra.mxu1 %v636_v12 }
  0x50   :  { %347 = vmatmul.mubr.bf16.vlgmr.msra.gmra.mrb[0].mxu0 %v637_v13  ;;  %387 = vmatmul.mubr.bf16.vlgmr.msra.gmra.mrb[0].mxu1 %v640_v14 }
  0x51   :  { %588 = vmatprep.mubr.msk.bf16.mxu0 %vm283_vm0, %v643_v15  ;;  %593 = vmatprep.mubr.msk.bf16.mxu1 %vm283_vm0, %v645_v16 }
  0x58   :  { %355 = vmatmul.mubr.bf16.gmra.mrb[4].mxu0 %v647_v17  ;;  %395 = vmatmul.mubr.bf16.gmra.mrb[4].mxu1 %v648_v18 }
  0x59   :  { %589 = vmatprep.mubr.msk.bf16.mxu0 %vm283_vm0, %v649_v19  ;;  %594 = vmatprep.mubr.msk.bf16.mxu1 %vm283_vm0, %v651_v20 }
  0x60   :  { %363 = vmatmul.mubr.bf16.gmra.mrb[8].mxu0 %v653_v21  ;;  %403 = vmatmul.mubr.bf16.gmra.mrb[8].mxu1 %v654_v22 }
  0x61   :  { %590 = vmatprep.mubr.msk.bf16.mxu0 %vm283_vm0, %v655_v23  ;;  %595 = vmatprep.mubr.msk.bf16.mxu1 %vm283_vm0, %v657_v24 }
  0x68   :  { %371 = vmatmul.mubr.bf16.gmra.mrb[12].mxu0 %v659_v25  ;;  %411 = vmatmul.mubr.bf16.gmra.mrb[12].mxu1 %v660_v26 }
  0x69   :  { %591 = vmatprep.mubr.msk.bf16.mxu0 %vm283_vm0, %v661_v27  ;;  %596 = vmatprep.mubr.msk.bf16.mxu1 %vm283_vm0, %v663_v28 }
  0x70   :  { %379 = vmatmul.mubr.bf16.gmra.mrb[16].mxu0 %v665_v29  ;;  %419 = vmatmul.mubr.bf16.gmra.mrb[16].mxu1 %v666_v30 }
 0x123   :  { %v348_v31 = vpop.f32.mrb[0].mxu0  ;;  %v388_v33 = vpop.f32.mrb[0].mxu1 }
 0x124   :  { %v350_v34 = vpop.f32.mrb[1].mxu0  ;;  %v390_v35 = vpop.f32.mrb[1].mxu1  ;;  %v497_v38 = vadd.f32 %v807_v32, %v348_v31  ;;  %v507_v39 = vadd.f32 %v807_v32, %v388_v33 }
 0x125   :  { %v351_v36 = vpop.f32.mrb[2].mxu0  ;;  %v391_v37 = vpop.f32.mrb[2].mxu1 }
 0x126   :  { %v353_v40 = vpop.f32.mrb[3].mxu0  ;;  %v393_v41 = vpop.f32.mrb[3].mxu1  ;;  %517 = vst [vmem:[#allocation7] sm:$0xff] %v497_v38  ;;  %527 = vst [vmem:[#allocation7 + $0x50] sm:$0xff] %v507_v39  ;;  %v498_v42 = vadd.f32 %v807_v32, %v351_v36  ;;  %v508_v43 = vadd.f32 %v807_v32, %v391_v37 }
 0x128   :  { %518 = vst [vmem:[#allocation7 + $0x8] sm:$0xff] %v498_v42  ;;  %528 = vst [vmem:[#allocation7 + $0x58] sm:$0xff] %v508_v43 }
 0x12b   :  { %v356_v44 = vpop.f32.mrb[4].mxu0  ;;  %v396_v45 = vpop.f32.mrb[4].mxu1 }
 0x12c   :  { %v358_v46 = vpop.f32.mrb[5].mxu0  ;;  %v398_v47 = vpop.f32.mrb[5].mxu1  ;;  %v499_v50 = vadd.f32 %v807_v32, %v356_v44  ;;  %v509_v51 = vadd.f32 %v807_v32, %v396_v45 }
 0x12d   :  { %v359_v48 = vpop.f32.mrb[6].mxu0  ;;  %v399_v49 = vpop.f32.mrb[6].mxu1 }
 0x12e   :  { %v361_v52 = vpop.f32.mrb[7].mxu0  ;;  %v401_v53 = vpop.f32.mrb[7].mxu1  ;;  %519 = vst [vmem:[#allocation7 + $0x10] sm:$0xff] %v499_v50  ;;  %529 = vst [vmem:[#allocation7 + $0x60] sm:$0xff] %v509_v51  ;;  %v500_v54 = vadd.f32 %v807_v32, %v359_v48  ;;  %v510_v55 = vadd.f32 %v807_v32, %v399_v49 }
 0x130   :  { %520 = vst [vmem:[#allocation7 + $0x18] sm:$0xff] %v500_v54  ;;  %530 = vst [vmem:[#allocation7 + $0x68] sm:$0xff] %v510_v55 }
 0x133   :  { %v364_v56 = vpop.f32.mrb[8].mxu0  ;;  %v404_v57 = vpop.f32.mrb[8].mxu1 }
 0x134   :  { %v366_v58 = vpop.f32.mrb[9].mxu0  ;;  %v406_v59 = vpop.f32.mrb[9].mxu1  ;;  %v501_v62 = vadd.f32 %v807_v32, %v364_v56  ;;  %v511_v63 = vadd.f32 %v807_v32, %v404_v57 }
 0x135   :  { %v367_v60 = vpop.f32.mrb[10].mxu0  ;;  %v407_v61 = vpop.f32.mrb[10].mxu1 }
 0x136   :  { %v369_v0 = vpop.f32.mrb[11].mxu0  ;;  %v409_v1 = vpop.f32.mrb[11].mxu1  ;;  %521 = vst [vmem:[#allocation7 + $0x20] sm:$0xff] %v501_v62  ;;  %531 = vst [vmem:[#allocation7 + $0x70] sm:$0xff] %v511_v63  ;;  %v502_v2 = vadd.f32 %v807_v32, %v367_v60  ;;  %v512_v3 = vadd.f32 %v807_v32, %v407_v61 }
 0x138   :  { %522 = vst [vmem:[#allocation7 + $0x28] sm:$0xff] %v502_v2  ;;  %532 = vst [vmem:[#allocation7 + $0x78] sm:$0xff] %v512_v3 }
 0x13b   :  { %v372_v4 = vpop.f32.mrb[12].mxu0  ;;  %v412_v5 = vpop.f32.mrb[12].mxu1 }
 0x13c   :  { %v374_v6 = vpop.f32.mrb[13].mxu0  ;;  %v414_v7 = vpop.f32.mrb[13].mxu1  ;;  %v503_v10 = vadd.f32 %v807_v32, %v372_v4  ;;  %v513_v11 = vadd.f32 %v807_v32, %v412_v5 }
 0x13d   :  { %v375_v8 = vpop.f32.mrb[14].mxu0  ;;  %v415_v9 = vpop.f32.mrb[14].mxu1 }
 0x13e   :  { %v377_v12 = vpop.f32.mrb[15].mxu0  ;;  %v417_v13 = vpop.f32.mrb[15].mxu1  ;;  %523 = vst [vmem:[#allocation7 + $0x30] sm:$0xff] %v503_v10  ;;  %533 = vst [vmem:[#allocation7 + $0x80] sm:$0xff] %v513_v11  ;;  %v504_v14 = vadd.f32 %v807_v32, %v375_v8  ;;  %v514_v15 = vadd.f32 %v807_v32, %v415_v9 }
 0x140   :  { %524 = vst [vmem:[#allocation7 + $0x38] sm:$0xff] %v504_v14  ;;  %534 = vst [vmem:[#allocation7 + $0x88] sm:$0xff] %v514_v15 }
 0x143   :  { %v380_v16 = vpop.f32.mrb[16].mxu0  ;;  %v420_v17 = vpop.f32.mrb[16].mxu1 }
 0x144   :  { %v382_v18 = vpop.f32.mrb[17].mxu0  ;;  %v422_v19 = vpop.f32.mrb[17].mxu1  ;;  %v505_v22 = vadd.f32 %v807_v32, %v380_v16  ;;  %v515_v23 = vadd.f32 %v807_v32, %v420_v17 }
 0x145   :  { %v383_v20 = vpop.f32.mrb[18].mxu0  ;;  %v423_v21 = vpop.f32.mrb[18].mxu1 }
 0x146   :  { %v385_v24 = vpop.f32.mrb[19].mxu0  ;;  %v425_v25 = vpop.f32.mrb[19].mxu1  ;;  %525 = vst [vmem:[#allocation7 + $0x40] sm:$0xff] %v505_v22  ;;  %535 = vst [vmem:[#allocation7 + $0x90] sm:$0xff] %v515_v23  ;;  %v506_v26 = vadd.f32 %v807_v32, %v383_v20  ;;  %v516_v27 = vadd.f32 %v807_v32, %v423_v21 }
 0x148   :  { %526 = vst [vmem:[#allocation7 + $0x48] sm:$0xff] %v506_v26  ;;  %536 = vst [vmem:[#allocation7 + $0x98] sm:$0xff] %v516_v27 }
 0x149   :  { %722 = shalt.err (!%p719_p6)
}
 0x14a   :  { %s723_s17 = scalar_lea.hbm %s847_s3, 2560 }
 0x14b   :  { %p724_p7 = scmp.ne.s32.totalorder %s847_s3, %s723_s17  ;;  %p727_p8 = scmp.lt.u32.totalorder %s723_s17, %s847_s3 }
 0x14d   :  { %p729_p9 = pnand %p727_p8, %p724_p7 }
 0x14f   :  { %732 = shalt.err (!%p729_p9)
}
 0x150   :  { %548 = dma.vmem_to_hbm [thread:$0]  %s543_s13, 2560, %s847_s3, [#allocation4], %s740_s22, %s740_s22, %s741_s23  }
 0x151   :  { %737 = dma.done.wait [#allocation4], 2560  }
 0x152   :  { %738 = vsyncadd [#allocation4], 4294964736 }
 0x153   :  { %552 = vsyncpa [#allocation3], 1 }
 0x154   :  { %553 = vsyncpa [#allocation6], 1 }
 0x155   :  { %554 = vsyncpa [#allocation4], 1 }

</bundles_post_ra>
